<compile_context>
chip_gen: v5e
topology: v5e:2x2
jax: 0.10.0
libtpu: 0.0.40
codegen_flags: <defaults>
</compile_context>

<pallas_src>
import functools

import jax
import jax.numpy as jnp
from jax.experimental import pallas as pl
from jax.experimental.pallas import tpu as pltpu


def cas_resb_kernel(x_ref, w1_ref, wdw_ref, w3_ref, o_ref, *,
                    n_resb, channels, bpb, height, width):
    # x_ref  : (C*bpb, H*W)         activation slab, row = c*bpb + b
    # w1_ref : (n, half*bpb, half)  per-row 1st 1x1 weights  [i, oc*bpb+b, ic]
    # wdw_ref: (n, half*bpb, 9)     per-row dw-3x3 taps      [i, c*bpb+b, dh*3+dw]
    # w3_ref : (n, half*bpb, half)  per-row 2nd 1x1 weights
    C = channels
    half = C // 2
    hB = half * bpb
    W = width
    HW = height * width

    x = x_ref[...].astype(jnp.float32)                     # (C*bpb, HW)
    w1 = w1_ref[...].astype(jnp.float32)
    wdw = wdw_ref[...].astype(jnp.float32)
    w3 = w3_ref[...].astype(jnp.float32)

    # Flattened-position validity masks, hoisted once for all ResBs / channels.
    pos = jax.lax.broadcasted_iota(jnp.int32, (1, HW), 1)
    colv = pos % W
    col_mask = {-1: colv >= 1, 0: None, 1: colv <= W - 2}
    row_mask = {-1: pos >= W, 0: None, 1: pos < (height - 1) * W}

    def leaky(v):
        return jnp.where(v > 0, v, 0.1 * v)

    def lane_roll(a, off):
        # s[r, p] = a[r, p + off] (circular along lanes); callers mask wraps.
        s = (-off) % HW
        return a if s == 0 else pltpu.roll(a, s, axis=1)

    def conv1x1(wcols, blocks):
        # wcols: (hB, half); blocks: list of `half` arrays of shape (bpb, HW).
        # y[oc*bpb + b, :] = sum_ic wcols[oc*bpb + b, ic] * blocks[ic][b, :]
        acc = None
        for ic in range(half):
            rep = jnp.concatenate([blocks[ic]] * half, axis=0)   # (hB, HW)
            term = wcols[:, ic:ic + 1] * rep                     # lane-broadcast
            acc = term if acc is None else acc + term
        return acc

    def dwconv3x3(y, wtaps):
        # y: (hB, HW) slab; wtaps: (hB, 9) per-row tap weights.
        # Column-shifted + column-masked variants, hoisted over the row shifts.
        variants = {}
        for odw in (-1, 0, 1):
            v = lane_roll(y, odw)
            m = col_mask[odw]
            variants[odw] = v if m is None else jnp.where(m, v, 0.0)
        acc = jnp.zeros_like(y)
        for odh in (-1, 0, 1):
            rm = row_mask[odh]
            for odw in (-1, 0, 1):
                t = (odh + 1) * 3 + (odw + 1)
                s = lane_roll(variants[odw], odh * W)
                if rm is not None:
                    s = jnp.where(rm, s, 0.0)
                acc = acc + wtaps[:, t:t + 1] * s
        return acc

    # Per-channel (bpb, HW) row blocks (static sublane slices of the slab).
    chan = [x[c * bpb:(c + 1) * bpb, :] for c in range(C)]

    for i in range(n_resb):                                 # small static unroll
        x1 = chan[:half]                                    # passthrough branch
        x2 = chan[half:]                                    # processed branch

        y = leaky(conv1x1(w1[i], x2))                       # (hB, HW)
        d = dwconv3x3(y, wdw[i])                            # (hB, HW)
        d_blocks = [d[m * bpb:(m + 1) * bpb, :] for m in range(half)]
        z = leaky(conv1x1(w3[i], d_blocks))                 # (hB, HW)
        z_blocks = [z[m * bpb:(m + 1) * bpb, :] for m in range(half)]

        # channel_shuffle(cat(x1, z), groups=2): pure list re-ordering.
        chan = []
        for m in range(half):
            chan.append(x1[m])
            chan.append(z_blocks[m])

    # Direct lane-dense writeback (HW in lanes), one block store per channel.
    for c in range(C):
        o_ref[c * bpb:(c + 1) * bpb, :] = chan[c].astype(o_ref.dtype)


def cas_resb_pallas(x_nchw, w1_oihw, wdw_oihw, w3_oihw):
    B, C, H, W = x_nchw.shape
    n, half = w1_oihw.shape[0], C // 2
    HW = H * W

    # Pack as many batch elements per grid step as fill the 8 sublanes.
    bpb = max(1, 8 // C)
    while B % bpb:
        bpb -= 1
    n_groups = B // bpb

    # Activation slab: (nG*C*bpb, HW), row = g*(C*bpb) + c*bpb + b_in_group.
    x_slab = (x_nchw.reshape(n_groups, bpb, C, HW)
              .transpose(0, 2, 1, 3)
              .reshape(n_groups * C * bpb, HW))

    # Per-row weight tables (row = oc*bpb + b), lane-broadcast in the kernel.
    w1_rows = jnp.repeat(w1_oihw[..., 0, 0], bpb, axis=1).astype(jnp.float32)
    w3_rows = jnp.repeat(w3_oihw[..., 0, 0], bpb, axis=1).astype(jnp.float32)
    wdw_rows = jnp.repeat(wdw_oihw.reshape(n, half, 9), bpb,
                          axis=1).astype(jnp.float32)

    kernel = functools.partial(cas_resb_kernel, n_resb=n, channels=C,
                               bpb=bpb, height=H, width=W)
    out_slab = pl.pallas_call(
        kernel,
        out_shape=jax.ShapeDtypeStruct((n_groups * C * bpb, HW), x_nchw.dtype),
        grid=(n_groups,),
        in_specs=[
            pl.BlockSpec((C * bpb, HW), lambda g: (g, 0)),
            pl.BlockSpec((n, half * bpb, half), lambda g: (0, 0, 0)),
            pl.BlockSpec((n, half * bpb, 9), lambda g: (0, 0, 0)),
            pl.BlockSpec((n, half * bpb, half), lambda g: (0, 0, 0)),
        ],
        out_specs=pl.BlockSpec((C * bpb, HW), lambda g: (g, 0)),
        compiler_params=pltpu.CompilerParams(
            dimension_semantics=("parallel",)),
    )(x_slab, w1_rows, wdw_rows, w3_rows)

    return (out_slab.reshape(n_groups, C, bpb, HW)
            .transpose(0, 2, 1, 3)
            .reshape(B, C, H, W))


def cas_resb_reference(x_nchw, w1_oihw, wdw_oihw, w3_oihw):
    # Pure-JAX NCHW reference mirroring the PyTorch module exactly.
    dn = ("NCHW", "OIHW", "NCHW")
    x = x_nchw
    n = w1_oihw.shape[0]
    for i in range(n):
        C = x.shape[1]
        half = C // 2
        x1, x2 = x[:, :half], x[:, half:]
        y = jax.lax.conv_general_dilated(x2, w1_oihw[i], (1, 1), "VALID",
                                         dimension_numbers=dn)
        y = jnp.where(y > 0, y, 0.1 * y)
        y = jax.lax.conv_general_dilated(y, wdw_oihw[i], (1, 1),
                                         ((1, 1), (1, 1)),
                                         dimension_numbers=dn,
                                         feature_group_count=half)
        y = jax.lax.conv_general_dilated(y, w3_oihw[i], (1, 1), "VALID",
                                         dimension_numbers=dn)
        y = jnp.where(y > 0, y, 0.1 * y)
        out = jnp.concatenate([x1, y], axis=1)
        b, c, h, w = out.shape
        x = out.reshape(b, 2, c // 2, h, w).transpose(0, 2, 1, 3, 4).reshape(
            b, c, h, w)
    return x


if __name__ == "__main__":
    n_ResB = 2
    B, C, H, W = 2, 4, 16, 16
    half = C // 2

    key = jax.random.PRNGKey(0)
    kx, k1, k2, k3 = jax.random.split(key, 4)

    # NCHW input (PyTorch convention) + deterministic synthetic weights (OIHW).
    x_nchw = jax.random.normal(kx, (B, C, H, W), jnp.float32)
    w1_oihw = 0.3 * jax.random.normal(k1, (n_ResB, half, half, 1, 1), jnp.float32)
    wdw_oihw = 0.3 * jax.random.normal(k2, (n_ResB, half, 1, 3, 3), jnp.float32)
    w3_oihw = 0.3 * jax.random.normal(k3, (n_ResB, half, half, 1, 1), jnp.float32)

    out_nchw = jax.block_until_ready(
        cas_resb_pallas(x_nchw, w1_oihw, wdw_oihw, w3_oihw))

    ref = jax.block_until_ready(
        cas_resb_reference(x_nchw, w1_oihw, wdw_oihw, w3_oihw))

    assert jnp.allclose(out_nchw, ref, atol=1e-4, rtol=1e-4), (
        float(jnp.max(jnp.abs(out_nchw - ref))))
    print("KERNEL_OK")
</pallas_src>

<mosaic_0001>
module attributes {stable_mosaic.version = 11 : i64} {
  func.func @cas_resb_kernel(%arg0: i32, %arg1: memref<8x256xf32, #tpu.memory_space<vmem>>, %arg2: memref<2x4x2xf32, #tpu.memory_space<vmem>>, %arg3: memref<2x4x9xf32, #tpu.memory_space<vmem>>, %arg4: memref<2x4x2xf32, #tpu.memory_space<vmem>>, %arg5: memref<8x256xf32, #tpu.memory_space<vmem>>) attributes {dimension_semantics = [#tpu.dimension_semantics<parallel>], iteration_bounds = array<i64: 1>, scalar_prefetch = 0 : i64, scratch_operands = 0 : i64, tpu.core_type = #tpu.core_type<tc>, window_params = [{transform_indices = @transform_0, window_bounds = array<i64: 8, 256>}, {pipeline_mode = #tpu.pipeline_mode<synchronous>, transform_indices = @transform_1, window_bounds = array<i64: 2, 4, 2>}, {pipeline_mode = #tpu.pipeline_mode<synchronous>, transform_indices = @transform_2, window_bounds = array<i64: 2, 4, 9>}, {pipeline_mode = #tpu.pipeline_mode<synchronous>, transform_indices = @transform_3, window_bounds = array<i64: 2, 4, 2>}, {transform_indices = @transform_4, window_bounds = array<i64: 8, 256>}]} {
    %c0 = arith.constant 0 : index
    %c0_0 = arith.constant 0 : index
    %0 = vector.load %arg1[%c0, %c0_0] : memref<8x256xf32, #tpu.memory_space<vmem>>, vector<8x256xf32>
    %c0_1 = arith.constant 0 : index
    %c0_2 = arith.constant 0 : index
    %c0_3 = arith.constant 0 : index
    %1 = vector.load %arg2[%c0_1, %c0_2, %c0_3] : memref<2x4x2xf32, #tpu.memory_space<vmem>>, vector<2x4x2xf32>
    %c0_4 = arith.constant 0 : index
    %c0_5 = arith.constant 0 : index
    %c0_6 = arith.constant 0 : index
    %2 = vector.load %arg3[%c0_4, %c0_5, %c0_6] : memref<2x4x9xf32, #tpu.memory_space<vmem>>, vector<2x4x9xf32>
    %c0_7 = arith.constant 0 : index
    %c0_8 = arith.constant 0 : index
    %c0_9 = arith.constant 0 : index
    %3 = vector.load %arg4[%c0_7, %c0_8, %c0_9] : memref<2x4x2xf32, #tpu.memory_space<vmem>>, vector<2x4x2xf32>
    %4 = tpu.iota {dimensions = array<i32: 1>} : vector<1x256xi32>
    %c16_i32 = arith.constant 16 : i32
    %c0_i32 = arith.constant 0 : i32
    %5 = arith.cmpi eq, %c16_i32, %c0_i32 : i32
    %c1_i32 = arith.constant 1 : i32
    %6 = arith.select %5, %c1_i32, %c16_i32 : i32
    %7 = vector.broadcast %6 : i32 to vector<1x256xi32>
    %8 = arith.remsi %4, %7 : vector<1x256xi32>
    %c0_i32_10 = arith.constant 0 : i32
    %9 = vector.broadcast %c0_i32_10 : i32 to vector<1x256xi32>
    %10 = arith.cmpi ne, %8, %9 : vector<1x256xi32>
    %c0_i32_11 = arith.constant 0 : i32
    %11 = vector.broadcast %c0_i32_11 : i32 to vector<1x256xi32>
    %12 = arith.cmpi slt, %8, %11 : vector<1x256xi32>
    %c0_i32_12 = arith.constant 0 : i32
    %13 = arith.cmpi slt, %6, %c0_i32_12 : i32
    %14 = vector.broadcast %13 : i1 to vector<1x256xi1>
    %15 = vector.broadcast %14 : vector<1x256xi1> to vector<1x256xi1>
    %16 = arith.xori %12, %15 : vector<1x256xi1>
    %17 = arith.andi %16, %10 : vector<1x256xi1>
    %18 = vector.broadcast %6 : i32 to vector<1x256xi32>
    %19 = arith.addi %8, %18 : vector<1x256xi32>
    %20 = arith.select %17, %19, %8 : vector<1x256xi1>, vector<1x256xi32>
    %c1_i32_13 = arith.constant 1 : i32
    %21 = vector.broadcast %c1_i32_13 : i32 to vector<1x256xi32>
    %22 = arith.cmpi sge, %20, %21 : vector<1x256xi32>
    %c14_i32 = arith.constant 14 : i32
    %23 = vector.broadcast %c14_i32 : i32 to vector<1x256xi32>
    %24 = arith.cmpi sle, %20, %23 : vector<1x256xi32>
    %c16_i32_14 = arith.constant 16 : i32
    %25 = vector.broadcast %c16_i32_14 : i32 to vector<1x256xi32>
    %26 = arith.cmpi sge, %4, %25 : vector<1x256xi32>
    %c240_i32 = arith.constant 240 : i32
    %27 = vector.broadcast %c240_i32 : i32 to vector<1x256xi32>
    %28 = arith.cmpi slt, %4, %27 : vector<1x256xi32>
    %29 = vector.extract_strided_slice %0 {offsets = [0, 0], sizes = [2, 256], strides = [1, 1]} : vector<8x256xf32> to vector<2x256xf32>
    %30 = vector.extract_strided_slice %0 {offsets = [2, 0], sizes = [2, 256], strides = [1, 1]} : vector<8x256xf32> to vector<2x256xf32>
    %31 = vector.extract_strided_slice %0 {offsets = [4, 0], sizes = [2, 256], strides = [1, 1]} : vector<8x256xf32> to vector<2x256xf32>
    %32 = vector.extract_strided_slice %0 {offsets = [6, 0], sizes = [2, 256], strides = [1, 1]} : vector<8x256xf32> to vector<2x256xf32>
    %33 = vector.extract_strided_slice %1 {offsets = [0, 0, 0], sizes = [1, 4, 2], strides = [1, 1, 1]} : vector<2x4x2xf32> to vector<1x4x2xf32>
    %34 = vector.shape_cast %33 : vector<1x4x2xf32> to vector<4x2xf32>
    %35 = tpu.concatenate %31, %31 in 0 : vector<2x256xf32>, vector<2x256xf32> -> vector<4x256xf32>
    %36 = vector.extract_strided_slice %34 {offsets = [0, 0], sizes = [4, 1], strides = [1, 1]} : vector<4x2xf32> to vector<4x1xf32>
    %37 = vector.broadcast %36 : vector<4x1xf32> to vector<4x256xf32>
    %38 = arith.mulf %37, %35 : vector<4x256xf32>
    %39 = tpu.concatenate %32, %32 in 0 : vector<2x256xf32>, vector<2x256xf32> -> vector<4x256xf32>
    %40 = vector.extract_strided_slice %34 {offsets = [0, 1], sizes = [4, 1], strides = [1, 1]} : vector<4x2xf32> to vector<4x1xf32>
    %41 = vector.broadcast %40 : vector<4x1xf32> to vector<4x256xf32>
    %42 = arith.mulf %41, %39 : vector<4x256xf32>
    %43 = arith.addf %38, %42 : vector<4x256xf32>
    %cst = arith.constant 0.000000e+00 : f32
    %44 = vector.broadcast %cst : f32 to vector<4x256xf32>
    %45 = arith.cmpf ogt, %43, %44 : vector<4x256xf32>
    %cst_15 = arith.constant 1.000000e-01 : f32
    %46 = vector.broadcast %cst_15 : f32 to vector<4x256xf32>
    %47 = arith.mulf %46, %43 : vector<4x256xf32>
    %48 = arith.select %45, %43, %47 : vector<4x256xi1>, vector<4x256xf32>
    %49 = vector.extract_strided_slice %2 {offsets = [0, 0, 0], sizes = [1, 4, 9], strides = [1, 1, 1]} : vector<2x4x9xf32> to vector<1x4x9xf32>
    %50 = vector.shape_cast %49 : vector<1x4x9xf32> to vector<4x9xf32>
    %c1_i32_16 = arith.constant 1 : i32
    %51 = tpu.dynamic_rotate %48 by %c1_i32_16 dim 1 : vector<4x256xf32>, i32 -> vector<4x256xf32>
    %cst_17 = arith.constant 0.000000e+00 : f32
    %52 = vector.shape_cast %22 : vector<1x256xi1> to vector<1x256xi1>
    %53 = vector.broadcast %52 : vector<1x256xi1> to vector<4x256xi1>
    %54 = vector.broadcast %cst_17 : f32 to vector<4x256xf32>
    %55 = arith.select %53, %51, %54 : vector<4x256xi1>, vector<4x256xf32>
    %c255_i32 = arith.constant 255 : i32
    %56 = tpu.dynamic_rotate %48 by %c255_i32 dim 1 : vector<4x256xf32>, i32 -> vector<4x256xf32>
    %cst_18 = arith.constant 0.000000e+00 : f32
    %57 = vector.shape_cast %24 : vector<1x256xi1> to vector<1x256xi1>
    %58 = vector.broadcast %57 : vector<1x256xi1> to vector<4x256xi1>
    %59 = vector.broadcast %cst_18 : f32 to vector<4x256xf32>
    %60 = arith.select %58, %56, %59 : vector<4x256xi1>, vector<4x256xf32>
    %cst_19 = arith.constant 0.000000e+00 : f32
    %61 = vector.broadcast %cst_19 : f32 to vector<4x256xf32>
    %c16_i32_20 = arith.constant 16 : i32
    %62 = tpu.dynamic_rotate %55 by %c16_i32_20 dim 1 : vector<4x256xf32>, i32 -> vector<4x256xf32>
    %cst_21 = arith.constant 0.000000e+00 : f32
    %63 = vector.shape_cast %26 : vector<1x256xi1> to vector<1x256xi1>
    %64 = vector.broadcast %63 : vector<1x256xi1> to vector<4x256xi1>
    %65 = vector.broadcast %cst_21 : f32 to vector<4x256xf32>
    %66 = arith.select %64, %62, %65 : vector<4x256xi1>, vector<4x256xf32>
    %67 = vector.extract_strided_slice %50 {offsets = [0, 0], sizes = [4, 1], strides = [1, 1]} : vector<4x9xf32> to vector<4x1xf32>
    %68 = vector.broadcast %67 : vector<4x1xf32> to vector<4x256xf32>
    %69 = arith.mulf %68, %66 : vector<4x256xf32>
    %70 = arith.addf %61, %69 : vector<4x256xf32>
    %c16_i32_22 = arith.constant 16 : i32
    %71 = tpu.dynamic_rotate %48 by %c16_i32_22 dim 1 : vector<4x256xf32>, i32 -> vector<4x256xf32>
    %cst_23 = arith.constant 0.000000e+00 : f32
    %72 = vector.shape_cast %26 : vector<1x256xi1> to vector<1x256xi1>
    %73 = vector.broadcast %72 : vector<1x256xi1> to vector<4x256xi1>
    %74 = vector.broadcast %cst_23 : f32 to vector<4x256xf32>
    %75 = arith.select %73, %71, %74 : vector<4x256xi1>, vector<4x256xf32>
    %76 = vector.extract_strided_slice %50 {offsets = [0, 1], sizes = [4, 1], strides = [1, 1]} : vector<4x9xf32> to vector<4x1xf32>
    %77 = vector.broadcast %76 : vector<4x1xf32> to vector<4x256xf32>
    %78 = arith.mulf %77, %75 : vector<4x256xf32>
    %79 = arith.addf %70, %78 : vector<4x256xf32>
    %c16_i32_24 = arith.constant 16 : i32
    %80 = tpu.dynamic_rotate %60 by %c16_i32_24 dim 1 : vector<4x256xf32>, i32 -> vector<4x256xf32>
    %cst_25 = arith.constant 0.000000e+00 : f32
    %81 = vector.shape_cast %26 : vector<1x256xi1> to vector<1x256xi1>
    %82 = vector.broadcast %81 : vector<1x256xi1> to vector<4x256xi1>
    %83 = vector.broadcast %cst_25 : f32 to vector<4x256xf32>
    %84 = arith.select %82, %80, %83 : vector<4x256xi1>, vector<4x256xf32>
    %85 = vector.extract_strided_slice %50 {offsets = [0, 2], sizes = [4, 1], strides = [1, 1]} : vector<4x9xf32> to vector<4x1xf32>
    %86 = vector.broadcast %85 : vector<4x1xf32> to vector<4x256xf32>
    %87 = arith.mulf %86, %84 : vector<4x256xf32>
    %88 = arith.addf %79, %87 : vector<4x256xf32>
    %89 = vector.extract_strided_slice %50 {offsets = [0, 3], sizes = [4, 1], strides = [1, 1]} : vector<4x9xf32> to vector<4x1xf32>
    %90 = vector.broadcast %89 : vector<4x1xf32> to vector<4x256xf32>
    %91 = arith.mulf %90, %55 : vector<4x256xf32>
    %92 = arith.addf %88, %91 : vector<4x256xf32>
    %93 = vector.extract_strided_slice %50 {offsets = [0, 4], sizes = [4, 1], strides = [1, 1]} : vector<4x9xf32> to vector<4x1xf32>
    %94 = vector.broadcast %93 : vector<4x1xf32> to vector<4x256xf32>
    %95 = arith.mulf %94, %48 : vector<4x256xf32>
    %96 = arith.addf %92, %95 : vector<4x256xf32>
    %97 = vector.extract_strided_slice %50 {offsets = [0, 5], sizes = [4, 1], strides = [1, 1]} : vector<4x9xf32> to vector<4x1xf32>
    %98 = vector.broadcast %97 : vector<4x1xf32> to vector<4x256xf32>
    %99 = arith.mulf %98, %60 : vector<4x256xf32>
    %100 = arith.addf %96, %99 : vector<4x256xf32>
    %c240_i32_26 = arith.constant 240 : i32
    %101 = tpu.dynamic_rotate %55 by %c240_i32_26 dim 1 : vector<4x256xf32>, i32 -> vector<4x256xf32>
    %cst_27 = arith.constant 0.000000e+00 : f32
    %102 = vector.shape_cast %28 : vector<1x256xi1> to vector<1x256xi1>
    %103 = vector.broadcast %102 : vector<1x256xi1> to vector<4x256xi1>
    %104 = vector.broadcast %cst_27 : f32 to vector<4x256xf32>
    %105 = arith.select %103, %101, %104 : vector<4x256xi1>, vector<4x256xf32>
    %106 = vector.extract_strided_slice %50 {offsets = [0, 6], sizes = [4, 1], strides = [1, 1]} : vector<4x9xf32> to vector<4x1xf32>
    %107 = vector.broadcast %106 : vector<4x1xf32> to vector<4x256xf32>
    %108 = arith.mulf %107, %105 : vector<4x256xf32>
    %109 = arith.addf %100, %108 : vector<4x256xf32>
    %c240_i32_28 = arith.constant 240 : i32
    %110 = tpu.dynamic_rotate %48 by %c240_i32_28 dim 1 : vector<4x256xf32>, i32 -> vector<4x256xf32>
    %cst_29 = arith.constant 0.000000e+00 : f32
    %111 = vector.shape_cast %28 : vector<1x256xi1> to vector<1x256xi1>
    %112 = vector.broadcast %111 : vector<1x256xi1> to vector<4x256xi1>
    %113 = vector.broadcast %cst_29 : f32 to vector<4x256xf32>
    %114 = arith.select %112, %110, %113 : vector<4x256xi1>, vector<4x256xf32>
    %115 = vector.extract_strided_slice %50 {offsets = [0, 7], sizes = [4, 1], strides = [1, 1]} : vector<4x9xf32> to vector<4x1xf32>
    %116 = vector.broadcast %115 : vector<4x1xf32> to vector<4x256xf32>
    %117 = arith.mulf %116, %114 : vector<4x256xf32>
    %118 = arith.addf %109, %117 : vector<4x256xf32>
    %c240_i32_30 = arith.constant 240 : i32
    %119 = tpu.dynamic_rotate %60 by %c240_i32_30 dim 1 : vector<4x256xf32>, i32 -> vector<4x256xf32>
    %cst_31 = arith.constant 0.000000e+00 : f32
    %120 = vector.shape_cast %28 : vector<1x256xi1> to vector<1x256xi1>
    %121 = vector.broadcast %120 : vector<1x256xi1> to vector<4x256xi1>
    %122 = vector.broadcast %cst_31 : f32 to vector<4x256xf32>
    %123 = arith.select %121, %119, %122 : vector<4x256xi1>, vector<4x256xf32>
    %124 = vector.extract_strided_slice %50 {offsets = [0, 8], sizes = [4, 1], strides = [1, 1]} : vector<4x9xf32> to vector<4x1xf32>
    %125 = vector.broadcast %124 : vector<4x1xf32> to vector<4x256xf32>
    %126 = arith.mulf %125, %123 : vector<4x256xf32>
    %127 = arith.addf %118, %126 : vector<4x256xf32>
    %128 = vector.extract_strided_slice %127 {offsets = [0, 0], sizes = [2, 256], strides = [1, 1]} : vector<4x256xf32> to vector<2x256xf32>
    %129 = vector.extract_strided_slice %127 {offsets = [2, 0], sizes = [2, 256], strides = [1, 1]} : vector<4x256xf32> to vector<2x256xf32>
    %130 = vector.extract_strided_slice %3 {offsets = [0, 0, 0], sizes = [1, 4, 2], strides = [1, 1, 1]} : vector<2x4x2xf32> to vector<1x4x2xf32>
    %131 = vector.shape_cast %130 : vector<1x4x2xf32> to vector<4x2xf32>
    %132 = tpu.concatenate %128, %128 in 0 : vector<2x256xf32>, vector<2x256xf32> -> vector<4x256xf32>
    %133 = vector.extract_strided_slice %131 {offsets = [0, 0], sizes = [4, 1], strides = [1, 1]} : vector<4x2xf32> to vector<4x1xf32>
    %134 = vector.broadcast %133 : vector<4x1xf32> to vector<4x256xf32>
    %135 = arith.mulf %134, %132 : vector<4x256xf32>
    %136 = tpu.concatenate %129, %129 in 0 : vector<2x256xf32>, vector<2x256xf32> -> vector<4x256xf32>
    %137 = vector.extract_strided_slice %131 {offsets = [0, 1], sizes = [4, 1], strides = [1, 1]} : vector<4x2xf32> to vector<4x1xf32>
    %138 = vector.broadcast %137 : vector<4x1xf32> to vector<4x256xf32>
    %139 = arith.mulf %138, %136 : vector<4x256xf32>
    %140 = arith.addf %135, %139 : vector<4x256xf32>
    %cst_32 = arith.constant 0.000000e+00 : f32
    %141 = vector.broadcast %cst_32 : f32 to vector<4x256xf32>
    %142 = arith.cmpf ogt, %140, %141 : vector<4x256xf32>
    %cst_33 = arith.constant 1.000000e-01 : f32
    %143 = vector.broadcast %cst_33 : f32 to vector<4x256xf32>
    %144 = arith.mulf %143, %140 : vector<4x256xf32>
    %145 = arith.select %142, %140, %144 : vector<4x256xi1>, vector<4x256xf32>
    %146 = vector.extract_strided_slice %145 {offsets = [0, 0], sizes = [2, 256], strides = [1, 1]} : vector<4x256xf32> to vector<2x256xf32>
    %147 = vector.extract_strided_slice %145 {offsets = [2, 0], sizes = [2, 256], strides = [1, 1]} : vector<4x256xf32> to vector<2x256xf32>
    %148 = vector.extract_strided_slice %1 {offsets = [1, 0, 0], sizes = [1, 4, 2], strides = [1, 1, 1]} : vector<2x4x2xf32> to vector<1x4x2xf32>
    %149 = vector.shape_cast %148 : vector<1x4x2xf32> to vector<4x2xf32>
    %150 = tpu.concatenate %30, %30 in 0 : vector<2x256xf32>, vector<2x256xf32> -> vector<4x256xf32>
    %151 = vector.extract_strided_slice %149 {offsets = [0, 0], sizes = [4, 1], strides = [1, 1]} : vector<4x2xf32> to vector<4x1xf32>
    %152 = vector.broadcast %151 : vector<4x1xf32> to vector<4x256xf32>
    %153 = arith.mulf %152, %150 : vector<4x256xf32>
    %154 = tpu.concatenate %147, %147 in 0 : vector<2x256xf32>, vector<2x256xf32> -> vector<4x256xf32>
    %155 = vector.extract_strided_slice %149 {offsets = [0, 1], sizes = [4, 1], strides = [1, 1]} : vector<4x2xf32> to vector<4x1xf32>
    %156 = vector.broadcast %155 : vector<4x1xf32> to vector<4x256xf32>
    %157 = arith.mulf %156, %154 : vector<4x256xf32>
    %158 = arith.addf %153, %157 : vector<4x256xf32>
    %cst_34 = arith.constant 0.000000e+00 : f32
    %159 = vector.broadcast %cst_34 : f32 to vector<4x256xf32>
    %160 = arith.cmpf ogt, %158, %159 : vector<4x256xf32>
    %cst_35 = arith.constant 1.000000e-01 : f32
    %161 = vector.broadcast %cst_35 : f32 to vector<4x256xf32>
    %162 = arith.mulf %161, %158 : vector<4x256xf32>
    %163 = arith.select %160, %158, %162 : vector<4x256xi1>, vector<4x256xf32>
    %164 = vector.extract_strided_slice %2 {offsets = [1, 0, 0], sizes = [1, 4, 9], strides = [1, 1, 1]} : vector<2x4x9xf32> to vector<1x4x9xf32>
    %165 = vector.shape_cast %164 : vector<1x4x9xf32> to vector<4x9xf32>
    %c1_i32_36 = arith.constant 1 : i32
    %166 = tpu.dynamic_rotate %163 by %c1_i32_36 dim 1 : vector<4x256xf32>, i32 -> vector<4x256xf32>
    %cst_37 = arith.constant 0.000000e+00 : f32
    %167 = vector.shape_cast %22 : vector<1x256xi1> to vector<1x256xi1>
    %168 = vector.broadcast %167 : vector<1x256xi1> to vector<4x256xi1>
    %169 = vector.broadcast %cst_37 : f32 to vector<4x256xf32>
    %170 = arith.select %168, %166, %169 : vector<4x256xi1>, vector<4x256xf32>
    %c255_i32_38 = arith.constant 255 : i32
    %171 = tpu.dynamic_rotate %163 by %c255_i32_38 dim 1 : vector<4x256xf32>, i32 -> vector<4x256xf32>
    %cst_39 = arith.constant 0.000000e+00 : f32
    %172 = vector.shape_cast %24 : vector<1x256xi1> to vector<1x256xi1>
    %173 = vector.broadcast %172 : vector<1x256xi1> to vector<4x256xi1>
    %174 = vector.broadcast %cst_39 : f32 to vector<4x256xf32>
    %175 = arith.select %173, %171, %174 : vector<4x256xi1>, vector<4x256xf32>
    %cst_40 = arith.constant 0.000000e+00 : f32
    %176 = vector.broadcast %cst_40 : f32 to vector<4x256xf32>
    %c16_i32_41 = arith.constant 16 : i32
    %177 = tpu.dynamic_rotate %170 by %c16_i32_41 dim 1 : vector<4x256xf32>, i32 -> vector<4x256xf32>
    %cst_42 = arith.constant 0.000000e+00 : f32
    %178 = vector.shape_cast %26 : vector<1x256xi1> to vector<1x256xi1>
    %179 = vector.broadcast %178 : vector<1x256xi1> to vector<4x256xi1>
    %180 = vector.broadcast %cst_42 : f32 to vector<4x256xf32>
    %181 = arith.select %179, %177, %180 : vector<4x256xi1>, vector<4x256xf32>
    %182 = vector.extract_strided_slice %165 {offsets = [0, 0], sizes = [4, 1], strides = [1, 1]} : vector<4x9xf32> to vector<4x1xf32>
    %183 = vector.broadcast %182 : vector<4x1xf32> to vector<4x256xf32>
    %184 = arith.mulf %183, %181 : vector<4x256xf32>
    %185 = arith.addf %176, %184 : vector<4x256xf32>
    %c16_i32_43 = arith.constant 16 : i32
    %186 = tpu.dynamic_rotate %163 by %c16_i32_43 dim 1 : vector<4x256xf32>, i32 -> vector<4x256xf32>
    %cst_44 = arith.constant 0.000000e+00 : f32
    %187 = vector.shape_cast %26 : vector<1x256xi1> to vector<1x256xi1>
    %188 = vector.broadcast %187 : vector<1x256xi1> to vector<4x256xi1>
    %189 = vector.broadcast %cst_44 : f32 to vector<4x256xf32>
    %190 = arith.select %188, %186, %189 : vector<4x256xi1>, vector<4x256xf32>
    %191 = vector.extract_strided_slice %165 {offsets = [0, 1], sizes = [4, 1], strides = [1, 1]} : vector<4x9xf32> to vector<4x1xf32>
    %192 = vector.broadcast %191 : vector<4x1xf32> to vector<4x256xf32>
    %193 = arith.mulf %192, %190 : vector<4x256xf32>
    %194 = arith.addf %185, %193 : vector<4x256xf32>
    %c16_i32_45 = arith.constant 16 : i32
    %195 = tpu.dynamic_rotate %175 by %c16_i32_45 dim 1 : vector<4x256xf32>, i32 -> vector<4x256xf32>
    %cst_46 = arith.constant 0.000000e+00 : f32
    %196 = vector.shape_cast %26 : vector<1x256xi1> to vector<1x256xi1>
    %197 = vector.broadcast %196 : vector<1x256xi1> to vector<4x256xi1>
    %198 = vector.broadcast %cst_46 : f32 to vector<4x256xf32>
    %199 = arith.select %197, %195, %198 : vector<4x256xi1>, vector<4x256xf32>
    %200 = vector.extract_strided_slice %165 {offsets = [0, 2], sizes = [4, 1], strides = [1, 1]} : vector<4x9xf32> to vector<4x1xf32>
    %201 = vector.broadcast %200 : vector<4x1xf32> to vector<4x256xf32>
    %202 = arith.mulf %201, %199 : vector<4x256xf32>
    %203 = arith.addf %194, %202 : vector<4x256xf32>
    %204 = vector.extract_strided_slice %165 {offsets = [0, 3], sizes = [4, 1], strides = [1, 1]} : vector<4x9xf32> to vector<4x1xf32>
    %205 = vector.broadcast %204 : vector<4x1xf32> to vector<4x256xf32>
    %206 = arith.mulf %205, %170 : vector<4x256xf32>
    %207 = arith.addf %203, %206 : vector<4x256xf32>
    %208 = vector.extract_strided_slice %165 {offsets = [0, 4], sizes = [4, 1], strides = [1, 1]} : vector<4x9xf32> to vector<4x1xf32>
    %209 = vector.broadcast %208 : vector<4x1xf32> to vector<4x256xf32>
    %210 = arith.mulf %209, %163 : vector<4x256xf32>
    %211 = arith.addf %207, %210 : vector<4x256xf32>
    %212 = vector.extract_strided_slice %165 {offsets = [0, 5], sizes = [4, 1], strides = [1, 1]} : vector<4x9xf32> to vector<4x1xf32>
    %213 = vector.broadcast %212 : vector<4x1xf32> to vector<4x256xf32>
    %214 = arith.mulf %213, %175 : vector<4x256xf32>
    %215 = arith.addf %211, %214 : vector<4x256xf32>
    %c240_i32_47 = arith.constant 240 : i32
    %216 = tpu.dynamic_rotate %170 by %c240_i32_47 dim 1 : vector<4x256xf32>, i32 -> vector<4x256xf32>
    %cst_48 = arith.constant 0.000000e+00 : f32
    %217 = vector.shape_cast %28 : vector<1x256xi1> to vector<1x256xi1>
    %218 = vector.broadcast %217 : vector<1x256xi1> to vector<4x256xi1>
    %219 = vector.broadcast %cst_48 : f32 to vector<4x256xf32>
    %220 = arith.select %218, %216, %219 : vector<4x256xi1>, vector<4x256xf32>
    %221 = vector.extract_strided_slice %165 {offsets = [0, 6], sizes = [4, 1], strides = [1, 1]} : vector<4x9xf32> to vector<4x1xf32>
    %222 = vector.broadcast %221 : vector<4x1xf32> to vector<4x256xf32>
    %223 = arith.mulf %222, %220 : vector<4x256xf32>
    %224 = arith.addf %215, %223 : vector<4x256xf32>
    %c240_i32_49 = arith.constant 240 : i32
    %225 = tpu.dynamic_rotate %163 by %c240_i32_49 dim 1 : vector<4x256xf32>, i32 -> vector<4x256xf32>
    %cst_50 = arith.constant 0.000000e+00 : f32
    %226 = vector.shape_cast %28 : vector<1x256xi1> to vector<1x256xi1>
    %227 = vector.broadcast %226 : vector<1x256xi1> to vector<4x256xi1>
    %228 = vector.broadcast %cst_50 : f32 to vector<4x256xf32>
    %229 = arith.select %227, %225, %228 : vector<4x256xi1>, vector<4x256xf32>
    %230 = vector.extract_strided_slice %165 {offsets = [0, 7], sizes = [4, 1], strides = [1, 1]} : vector<4x9xf32> to vector<4x1xf32>
    %231 = vector.broadcast %230 : vector<4x1xf32> to vector<4x256xf32>
    %232 = arith.mulf %231, %229 : vector<4x256xf32>
    %233 = arith.addf %224, %232 : vector<4x256xf32>
    %c240_i32_51 = arith.constant 240 : i32
    %234 = tpu.dynamic_rotate %175 by %c240_i32_51 dim 1 : vector<4x256xf32>, i32 -> vector<4x256xf32>
    %cst_52 = arith.constant 0.000000e+00 : f32
    %235 = vector.shape_cast %28 : vector<1x256xi1> to vector<1x256xi1>
    %236 = vector.broadcast %235 : vector<1x256xi1> to vector<4x256xi1>
    %237 = vector.broadcast %cst_52 : f32 to vector<4x256xf32>
    %238 = arith.select %236, %234, %237 : vector<4x256xi1>, vector<4x256xf32>
    %239 = vector.extract_strided_slice %165 {offsets = [0, 8], sizes = [4, 1], strides = [1, 1]} : vector<4x9xf32> to vector<4x1xf32>
    %240 = vector.broadcast %239 : vector<4x1xf32> to vector<4x256xf32>
    %241 = arith.mulf %240, %238 : vector<4x256xf32>
    %242 = arith.addf %233, %241 : vector<4x256xf32>
    %243 = vector.extract_strided_slice %242 {offsets = [0, 0], sizes = [2, 256], strides = [1, 1]} : vector<4x256xf32> to vector<2x256xf32>
    %244 = vector.extract_strided_slice %242 {offsets = [2, 0], sizes = [2, 256], strides = [1, 1]} : vector<4x256xf32> to vector<2x256xf32>
    %245 = vector.extract_strided_slice %3 {offsets = [1, 0, 0], sizes = [1, 4, 2], strides = [1, 1, 1]} : vector<2x4x2xf32> to vector<1x4x2xf32>
    %246 = vector.shape_cast %245 : vector<1x4x2xf32> to vector<4x2xf32>
    %247 = tpu.concatenate %243, %243 in 0 : vector<2x256xf32>, vector<2x256xf32> -> vector<4x256xf32>
    %248 = vector.extract_strided_slice %246 {offsets = [0, 0], sizes = [4, 1], strides = [1, 1]} : vector<4x2xf32> to vector<4x1xf32>
    %249 = vector.broadcast %248 : vector<4x1xf32> to vector<4x256xf32>
    %250 = arith.mulf %249, %247 : vector<4x256xf32>
    %251 = tpu.concatenate %244, %244 in 0 : vector<2x256xf32>, vector<2x256xf32> -> vector<4x256xf32>
    %252 = vector.extract_strided_slice %246 {offsets = [0, 1], sizes = [4, 1], strides = [1, 1]} : vector<4x2xf32> to vector<4x1xf32>
    %253 = vector.broadcast %252 : vector<4x1xf32> to vector<4x256xf32>
    %254 = arith.mulf %253, %251 : vector<4x256xf32>
    %255 = arith.addf %250, %254 : vector<4x256xf32>
    %cst_53 = arith.constant 0.000000e+00 : f32
    %256 = vector.broadcast %cst_53 : f32 to vector<4x256xf32>
    %257 = arith.cmpf ogt, %255, %256 : vector<4x256xf32>
    %cst_54 = arith.constant 1.000000e-01 : f32
    %258 = vector.broadcast %cst_54 : f32 to vector<4x256xf32>
    %259 = arith.mulf %258, %255 : vector<4x256xf32>
    %260 = arith.select %257, %255, %259 : vector<4x256xi1>, vector<4x256xf32>
    %261 = vector.extract_strided_slice %260 {offsets = [0, 0], sizes = [2, 256], strides = [1, 1]} : vector<4x256xf32> to vector<2x256xf32>
    %262 = vector.extract_strided_slice %260 {offsets = [2, 0], sizes = [2, 256], strides = [1, 1]} : vector<4x256xf32> to vector<2x256xf32>
    %c0_55 = arith.constant 0 : index
    %c0_56 = arith.constant 0 : index
    %263 = vector.load %arg5[%c0_55, %c0_56] : memref<8x256xf32, #tpu.memory_space<vmem>>, vector<2x256xf32>
    tpu.vector_store %arg5[%c0_55, %c0_56], %29 {strides = array<i32>} : memref<8x256xf32, #tpu.memory_space<vmem>>, vector<2x256xf32>,
    %c2 = arith.constant 2 : index
    %c0_57 = arith.constant 0 : index
    %264 = vector.load %arg5[%c2, %c0_57] : memref<8x256xf32, #tpu.memory_space<vmem>>, vector<2x256xf32>
    tpu.vector_store %arg5[%c2, %c0_57], %261 {strides = array<i32>} : memref<8x256xf32, #tpu.memory_space<vmem>>, vector<2x256xf32>,
    %c4 = arith.constant 4 : index
    %c0_58 = arith.constant 0 : index
    %265 = vector.load %arg5[%c4, %c0_58] : memref<8x256xf32, #tpu.memory_space<vmem>>, vector<2x256xf32>
    tpu.vector_store %arg5[%c4, %c0_58], %146 {strides = array<i32>} : memref<8x256xf32, #tpu.memory_space<vmem>>, vector<2x256xf32>,
    %c6 = arith.constant 6 : index
    %c0_59 = arith.constant 0 : index
    %266 = vector.load %arg5[%c6, %c0_59] : memref<8x256xf32, #tpu.memory_space<vmem>>, vector<2x256xf32>
    tpu.vector_store %arg5[%c6, %c0_59], %262 {strides = array<i32>} : memref<8x256xf32, #tpu.memory_space<vmem>>, vector<2x256xf32>,
    return
  }
  func.func @transform_0(%arg0: i32) -> (i32, i32) {
    %c0_i32 = arith.constant 0 : i32
    %c0_i32_0 = arith.constant 0 : i32
    return %arg0, %c0_i32 : i32, i32
  }
  func.func @transform_1(%arg0: i32) -> (i32, i32, i32) {
    %c0_i32 = arith.constant 0 : i32
    %c0_i32_0 = arith.constant 0 : i32
    %c0_i32_1 = arith.constant 0 : i32
    %c0_i32_2 = arith.constant 0 : i32
    return %c0_i32, %c0_i32_0, %c0_i32_1 : i32, i32, i32
  }
  func.func @transform_2(%arg0: i32) -> (i32, i32, i32) {
    %c0_i32 = arith.constant 0 : i32
    %c0_i32_0 = arith.constant 0 : i32
    %c0_i32_1 = arith.constant 0 : i32
    %c0_i32_2 = arith.constant 0 : i32
    return %c0_i32, %c0_i32_0, %c0_i32_1 : i32, i32, i32
  }
  func.func @transform_3(%arg0: i32) -> (i32, i32, i32) {
    %c0_i32 = arith.constant 0 : i32
    %c0_i32_0 = arith.constant 0 : i32
    %c0_i32_1 = arith.constant 0 : i32
    %c0_i32_2 = arith.constant 0 : i32
    return %c0_i32, %c0_i32_0, %c0_i32_1 : i32, i32, i32
  }
  func.func @transform_4(%arg0: i32) -> (i32, i32) {
    %c0_i32 = arith.constant 0 : i32
    %c0_i32_0 = arith.constant 0 : i32
    return %arg0, %c0_i32 : i32, i32
  }
}

</mosaic_0001>

<bundles_post_ra>
// kernel: tpu_custom_call.1
= control target key start
LH: loop header
LB: loop body
LE: loop exit
PB: predicated region body
PF: predicated region fallthrough
CT: control target
= control target key end

     0   :  { %9 = vsyncpa [#allocation3], 0  ;;  %s988_s0 = inlined_call_operand.vmem [shape: f32[8,256], index: 0, kind: input, shape index: {}]   ;;  %s989_s1 = inlined_call_operand.vmem [shape: f32[2,4,2], index: 1, kind: input, shape index: {}]   ;;  %s990_s2 = inlined_call_operand.hbm [shape: f32[2,4,9], index: 2, kind: input, shape index: {}]   ;;  %s991_s3 = inlined_call_operand.vmem [shape: f32[2,4,2], index: 3, kind: input, shape index: {}]   ;;  %s992_s4 = inlined_call_operand.hbm [shape: f32[8,256], index: 4, kind: output, shape index: {}]  }
   0x1   :  { %10 = vsyncpa [#allocation4], 0  ;;  %s19_s17 = sshll.u32 %s990_s2, 4  ;;  %s643_s18 = smov [#allocation2]   ;;  %s20_s17 = int_to_ptr.hbm [resolvable:$true] %s19_s17 }
   0x2   :  { %s21_s19 = sshll.u32 %s643_s18, 4  ;;  %s644_s20 = smov 64   ;;  %s22_s19 = int_to_ptr.vmem [resolvable:$true] %s21_s19 }
   0x3   :  { %s645_s21 = smov 4  }
   0x4   :  { %27 = dma.hbm_to_vmem [thread:$0]  %s20_s17, 128, %s22_s19, [#allocation3], %s644_s20, %s644_s20, %s645_s21  }
   0x5   :  { %639 = dma.done.wait [#allocation3], 128  }
   0x6   :  { %640 = vsyncadd [#allocation3], 4294967168  ;;  %v646_v0 = vmov 0   ;;  %v647_v1 = vmov 1   ;;  %v36_v2 = vld [vmem:[%s989_s1] sm:$0xf]  ;;  %v42_v34 = vlaneseq }
   0x7   :  { %568 = vset.pattern.permute.xlu0 %v646_v0  ;;  %570 = vset.pattern.permute.xlu1 %v647_v1  ;;  %v693_v3 = vld [vmem:[#allocation2] sm:$0xf]  ;;  %v648_v4 = vmov 4   ;;  %v709_v6 = vld [vmem:[%s988_s0 + $0x8] sm:$0xff]  ;;  %v649_v7 = vmov 3   ;;  %v650_v8 = vmov 6  }
   0x8   :  { %92 = vperm.xlu0 %568, %v36_v2   ;;  %174 = vperm.xlu1 %570, %v693_v3   ;;  %v704_v5 = vld [vmem:[%s988_s0] sm:$0xff]  ;;  %513 = vst [vmem:[#allocation5 + $0x8] sm:$0x3] %v709_v6  ;;  %v651_v9 = vmov 2   ;;  %vm87_vm0 = vcmask 1041408   ;;  %v98_v14 = vrot.slane %v709_v6, 6 }
   0x9   :  { %512 = vst [vmem:[#allocation5] sm:$0x3] %v704_v5  ;;  %572 = vset.pattern.permute.xlu2 %v649_v7  ;;  %v79_v11 = vrot.slane %v704_v5, 4  ;;  %v83_v12 = vrot.slane %v704_v5, 2  ;;  %v97_v13 = vrot.slane %v704_v5, 6  ;;  %v80_v15 = vrot.slane %v709_v6, 4 }
   0xa   :  { %198 = vperm.xlu2 %572, %v693_v3   ;;  %v84_v16 = vrot.slane %v709_v6, 2  ;;  %s652_s0 = smov 127   ;;  %s653_s27 = smov 1   ;;  %v655_v32 = vmov 5   ;;  %v752_v35 = vand.u32 127, %v42_v34  ;;  %v657_v45 = vmov 7  }
   0xb   :  { %v88_v17 = vsel %vm87_vm0, %v79_v11, %v83_v12  ;;  %v101_v18 = vsel %vm87_vm0, %v97_v13, %v79_v11  ;;  %v102_v20 = vsel %vm87_vm0, %v98_v14, %v80_v15  ;;  %s654_s28 = smov 16   ;;  %s656_s29 = smov 112   ;;  %v40_v53 = vld [vmem:[%s991_s3] sm:$0xf]  ;;  %v658_v60 = vmov 8  }
   0xc   :  { %v89_v23 = vsel %vm87_vm0, %v80_v15, %v84_v16  ;;  %v755_v36 = vadd.s32 128, %v752_v35  ;;  %vm134_vm3 = vcmp.lt.s32.totalorder %v752_v35, 127  ;;  %v49_v44 = vand.u32 15, %v752_v35  ;;  %v37_v61 = vld [vmem:[%s989_s1 + $0x4] sm:$0xf]  ;;  %s541_s12 = sshll.u32 %s992_s4, 4  ;;  %s542_s12 = int_to_ptr.hbm [resolvable:$true] %s541_s12 }
   0xd   :  { %vm121_vm6 = vcmp.lt.s32.totalorder %v752_v35, 1  ;;  %vm147_vm9 = vcmp.lt.s32.totalorder %v752_v35, 16  ;;  %vm73_vm10 = vcmp.ge.s32.totalorder %v752_v35, 16  ;;  %vm225_vm11 = vcmp.lt.s32.totalorder %v752_v35, 112  ;;  %v41_v50 = vld [vmem:[%s991_s3 + $0x4] sm:$0xf] }
   0xe   :  { %v56_v38 = vand.u32 15, %v755_v36  ;;  %vm779_vm5 = vcmp.le.s32.totalorder %v49_v44, 14  ;;  %vm790_vm7 = vcmp.ge.s32.totalorder %v49_v44, 1  ;;  %vm76_vm12 = vcmp.lt.s32.totalorder %v755_v36, 240  ;;  %s659_s3 = smov [#allocation5]  }
   0xf   :  { %s539_s9 = sshll.u32 %s659_s3, 4  ;;  %s540_s9 = int_to_ptr.vmem [resolvable:$true] %s539_s9 }
  0x10   :  { %569 = vset.pattern.permute.xlu0 %v647_v1  ;;  %571 = vset.pattern.permute.xlu1 %v651_v9  ;;  %vm759_vm4 = vcmp.le.s32.totalorder %v56_v38, 14  ;;  %vm794_vm8 = vcmp.ge.s32.totalorder %v56_v38, 1 }
  0x11   :  { %104 = vperm.xlu0 %569, %v36_v2  }
  0x12   :  { %576 = vset.pattern.permute.xlu2 %v650_v8 }
  0x19   :  { %573 = vset.pattern.permute.xlu0 %v648_v4 }
  0x1a   :  { %206 = vperm.xlu0 %573, %v693_v3  }
  0x22   :  { %574 = vset.pattern.permute.xlu0 %v646_v0 }
  0x23   :  { %158 = vperm.xlu0 %574, %v693_v3  }
  0x64   :  { %v199_v33 = vpop.permute.xlu2 %198 }
  0x7a   :  { %v93_v10 = vpop.permute.xlu0 %92  ;;  %v771_v43 = vpop.permute.xlu1 %174 }
  0x7b   :  { %v95_v21 = vmul.f32 %v93_v10, %v88_v17  ;;  %v96_v26 = vmul.f32 %v93_v10, %v89_v23 }
  0x83   :  { %v105_v19 = vpop.permute.xlu0 %104 }
  0x84   :  { %v107_v22 = vmul.f32 %v105_v19, %v101_v18  ;;  %v108_v24 = vmul.f32 %v105_v19, %v102_v20 }
  0x86   :  { %v109_v25 = vadd.f32 %v107_v22, %v95_v21  ;;  %v110_v28 = vadd.f32 %v108_v24, %v96_v26 }
  0x88   :  { %v113_v27 = vmul.f32 0.1, %v109_v25  ;;  %vm111_vm1 = vcmp.gt.f32.partialorder %v109_v25, 0.0  ;;  %v114_v30 = vmul.f32 0.1, %v110_v28  ;;  %vm112_vm2 = vcmp.gt.f32.partialorder %v110_v28, 0.0 }
  0x8a   :  { %v731_v29 = vsel %vm111_vm1, %v109_v25, %v113_v27  ;;  %v737_v31 = vsel %vm112_vm2, %v110_v28, %v114_v30 }
  0x8b   :  { %130 = vrot.lane.b32.xlu2 %v731_v29, %s652_s0  ;;  %117 = vrot.lane.b32.xlu1 %v731_v29, %s653_s27 }
  0x93   :  { %132 = vrot.lane.b32.xlu2 %v737_v31, %s652_s0  ;;  %119 = vrot.lane.b32.xlu1 %v737_v31, %s653_s27 }
  0x9b   :  { %235 = vperm.xlu2 %576, %v693_v3   ;;  %190 = vperm.xlu1 %571, %v693_v3  }
  0xa3   :  { %167 = vrot.lane.b32.xlu2 %v737_v31, %s654_s28  ;;  %575 = vset.pattern.permute.xlu1 %v655_v32 }
  0xa4   :  { %214 = vperm.xlu1 %575, %v693_v3   ;;  %577 = vset.pattern.permute.xlu2 %v657_v45 }
  0xac   :  { %165 = vrot.lane.b32.xlu1 %v731_v29, %s654_s28 }
  0xad   :  { %579 = vset.pattern.permute.xlu1 %v647_v1 }
  0xe5   :  { %v131_v37 = vpop.permute.xlu2 %130 }
  0xed   :  { %v133_v40 = vpop.permute.xlu2 %132 }
  0xee   :  { %v136_v41 = vsel %vm134_vm3, %v133_v40, %v131_v37  ;;  %v135_v46 = vsel %vm134_vm3, %v131_v37, %v133_v40 }
  0xef   :  { %v767_v42 = vsel %vm759_vm4, %v136_v41, 0.0  ;;  %v785_v49 = vsel %vm779_vm5, %v135_v46, 0.0 }
  0xf0   :  { %183 = vrot.lane.b32.xlu0 %v767_v42, %s654_s28 }
  0xf5   :  { %v236_v62 = vpop.permute.xlu2 %235 }
  0xf8   :  { %242 = vrot.lane.b32.xlu0 %v731_v29, %s656_s29 }
  0xfd   :  { %v118_v48 = vpop.permute.xlu1 %117  ;;  %v168_v2 = vpop.permute.xlu2 %167 }
 0x100   :  { %258 = vrot.lane.b32.xlu0 %v785_v49, %s656_s29 }
 0x105   :  { %v120_v52 = vpop.permute.xlu1 %119 }
 0x106   :  { %v122_v54 = vsel %vm121_vm6, %v118_v48, %v120_v52  ;;  %v123_v55 = vsel %vm121_vm6, %v120_v52, %v118_v48 }
 0x107   :  { %v128_v56 = vsel %vm790_vm7, %v123_v55, 0.0  ;;  %v129_v57 = vsel %vm794_vm8, %v122_v54, 0.0 }
 0x108   :  { %284 = vperm.xlu0 %574, %v40_v53   ;;  %143 = vrot.lane.b32.xlu1 %v128_v56, %s654_s28  ;;  %v201_v58 = vmul.f32 %v199_v33, %v128_v56  ;;  %v202_v59 = vmul.f32 %v199_v33, %v129_v57 }
 0x109   :  { %145 = vrot.lane.b32.xlu2 %v129_v57, %s654_s28 }
 0x10d   :  { %v191_v63 = vpop.permute.xlu1 %190 }
 0x110   :  { %244 = vrot.lane.b32.xlu1 %v737_v31, %s656_s29  ;;  %583 = vset.pattern.permute.xlu0 %v649_v7  ;;  %v207_v7 = vpop.permute.xlu0 %206 }
 0x111   :  { %181 = vrot.lane.b32.xlu2 %v785_v49, %s654_s28  ;;  %v210_v46 = vmul.f32 %v207_v7, %v737_v31 }
 0x116   :  { %v215_v10 = vpop.permute.xlu1 %214 }
 0x117   :  { %v218_v55 = vmul.f32 %v215_v10, %v767_v42 }
 0x118   :  { %223 = vrot.lane.b32.xlu1 %v129_v57, %s656_s29  ;;  %v159_v13 = vpop.permute.xlu0 %158 }
 0x119   :  { %251 = vperm.xlu2 %577, %v693_v3  }
 0x11e   :  { %v166_v14 = vpop.permute.xlu1 %165 }
 0x11f   :  { %v170_v15 = vsel %vm147_vm9, %v168_v2, %v166_v14 }
 0x120   :  { %260 = vrot.lane.b32.xlu1 %v767_v42, %s656_s29  ;;  %v171_v19 = vsel %vm73_vm10, %v170_v15, 0.0 }
 0x121   :  { %221 = vrot.lane.b32.xlu2 %v128_v56, %s656_s29  ;;  %v177_v28 = vmul.f32 %v771_v43, %v171_v19 }
 0x122   :  { %578 = vset.pattern.permute.xlu2 %v658_v60 }
 0x128   :  { %296 = vperm.xlu1 %579, %v40_v53   ;;  %v209_v53 = vmul.f32 %v207_v7, %v731_v29 }
 0x129   :  { %267 = vperm.xlu2 %578, %v693_v3  }
 0x130   :  { %327 = vperm.xlu1 %579, %v37_v61  }
 0x131   :  { %580 = vset.pattern.permute.xlu2 %v646_v0 }
 0x132   :  { %313 = vperm.xlu2 %580, %v37_v61  }
 0x138   :  { %584 = vset.pattern.permute.xlu1 %v648_v4  ;;  %v169_v4 = vsel %vm147_vm9, %v166_v14, %v168_v2 }
 0x139   :  { %v178_v24 = vmul.f32 %v771_v43, %v169_v4  ;;  %v217_v43 = vmul.f32 %v215_v10, %v785_v49 }
 0x162   :  { %v184_v17 = vpop.permute.xlu0 %183 }
 0x163   :  { %v146_v11 = vpop.permute.xlu2 %145 }
 0x16a   :  { %v243_v61 = vpop.permute.xlu0 %242 }
 0x16b   :  { %v182_v3 = vpop.permute.xlu2 %181 }
 0x16c   :  { %v186_v18 = vsel %vm147_vm9, %v184_v17, %v182_v3  ;;  %v185_v21 = vsel %vm147_vm9, %v182_v3, %v184_v17 }
 0x16d   :  { %v187_v25 = vsel %vm73_vm10, %v186_v18, 0.0  ;;  %v194_v33 = vmul.f32 %v191_v63, %v185_v21 }
 0x16e   :  { %v193_v37 = vmul.f32 %v191_v63, %v187_v25 }
 0x172   :  { %v259_v10 = vpop.permute.xlu0 %258 }
 0x173   :  { %v252_v38 = vpop.permute.xlu2 %251 }
 0x17a   :  { %v144_v20 = vpop.permute.xlu1 %143 }
 0x17b   :  { %v148_v22 = vsel %vm147_vm9, %v144_v20, %v146_v11  ;;  %v149_v23 = vsel %vm147_vm9, %v146_v11, %v144_v20  ;;  %v222_v11 = vpop.permute.xlu2 %221 }
 0x17c   :  { %v154_v26 = vsel %vm73_vm10, %v149_v23, 0.0  ;;  %v162_v27 = vmul.f32 %v159_v13, %v148_v22 }
 0x17d   :  { %v161_v30 = vmul.f32 %v159_v13, %v154_v26 }
 0x17e   :  { %v180_v34 = vadd.f32 %v178_v24, %v162_v27 }
 0x17f   :  { %v179_v40 = vadd.f32 %v177_v28, %v161_v30 }
 0x180   :  { %v196_v41 = vadd.f32 %v194_v33, %v180_v34 }
 0x181   :  { %v195_v44 = vadd.f32 %v193_v37, %v179_v40  ;;  %v285_v37 = vpop.permute.xlu0 %284 }
 0x182   :  { %v204_v48 = vadd.f32 %v202_v59, %v196_v41  ;;  %v245_v52 = vpop.permute.xlu1 %244 }
 0x183   :  { %v203_v54 = vadd.f32 %v201_v58, %v195_v44  ;;  %v247_v58 = vsel %vm225_vm11, %v245_v52, %v243_v61  ;;  %v246_v7 = vsel %vm225_vm11, %v243_v61, %v245_v52  ;;  %v268_v17 = vpop.permute.xlu2 %267 }
 0x184   :  { %v212_v56 = vadd.f32 %v210_v46, %v204_v48  ;;  %v249_v14 = vsel %vm76_vm12, %v247_v58, 0.0  ;;  %v254_v4 = vmul.f32 %v252_v38, %v246_v7 }
 0x185   :  { %v211_v57 = vadd.f32 %v209_v53, %v203_v54  ;;  %v255_v19 = vmul.f32 %v252_v38, %v249_v14 }
 0x186   :  { %v220_v2 = vadd.f32 %v218_v55, %v212_v56 }
 0x187   :  { %v219_v63 = vadd.f32 %v217_v43, %v211_v57 }
 0x18a   :  { %v224_v13 = vpop.permute.xlu1 %223 }
 0x18b   :  { %v226_v31 = vsel %vm225_vm11, %v222_v11, %v224_v13  ;;  %v227_v29 = vsel %vm225_vm11, %v224_v13, %v222_v11 }
 0x18c   :  { %v233_v42 = vsel %vm76_vm12, %v227_v29, 0.0  ;;  %v238_v49 = vmul.f32 %v236_v62, %v226_v31 }
 0x18d   :  { %v239_v59 = vmul.f32 %v236_v62, %v233_v42 }
 0x18e   :  { %v240_v3 = vadd.f32 %v238_v49, %v219_v63  ;;  %v314_v63 = vpop.permute.xlu2 %313 }
 0x18f   :  { %v241_v15 = vadd.f32 %v239_v59, %v220_v2  ;;  %v310_v2 = vsel %vm87_vm0, %v84_v16, %v709_v6 }
 0x190   :  { %v256_v62 = vadd.f32 %v254_v4, %v240_v3  ;;  %v317_v49 = vmul.f32 %v314_v63, %v310_v2 }
 0x191   :  { %v257_v24 = vadd.f32 %v255_v19, %v241_v15 }
 0x192   :  { %v261_v18 = vpop.permute.xlu1 %260 }
 0x193   :  { %v262_v20 = vsel %vm225_vm11, %v259_v10, %v261_v18  ;;  %v263_v21 = vsel %vm225_vm11, %v261_v18, %v259_v10  ;;  %v309_v10 = vsel %vm87_vm0, %v83_v12, %v704_v5  ;;  %v39_v5 = vld [vmem:[#allocation2 + $0x4] sm:$0xf] }
 0x194   :  { %v265_v22 = vsel %vm76_vm12, %v263_v21, 0.0  ;;  %v270_v23 = vmul.f32 %v268_v17, %v262_v20  ;;  %v316_v14 = vmul.f32 %v314_v63, %v309_v10 }
 0x195   :  { %v271_v25 = vmul.f32 %v268_v17, %v265_v22 }
 0x196   :  { %v272_v26 = vadd.f32 %v270_v23, %v256_v62 }
 0x197   :  { %v273_v27 = vadd.f32 %v271_v25, %v257_v24 }
 0x198   :  { %v276_v28 = vrot.slane %v272_v26, 6  ;;  %v289_v30 = vrot.slane %v272_v26, 2 }
 0x199   :  { %v277_v33 = vrot.slane %v273_v27, 6  ;;  %v290_v34 = vrot.slane %v273_v27, 2 }
 0x19a   :  { %v297_v38 = vpop.permute.xlu1 %296  ;;  %v280_v40 = vsel %vm87_vm0, %v272_v26, %v276_v28  ;;  %v293_v41 = vsel %vm87_vm0, %v289_v30, %v272_v26 }
 0x19b   :  { %v281_v44 = vsel %vm87_vm0, %v273_v27, %v277_v33  ;;  %v294_v46 = vsel %vm87_vm0, %v290_v34, %v273_v27  ;;  %v287_v48 = vmul.f32 %v285_v37, %v280_v40  ;;  %v299_v52 = vmul.f32 %v297_v38, %v293_v41 }
 0x19c   :  { %v288_v53 = vmul.f32 %v285_v37, %v281_v44  ;;  %v300_v54 = vmul.f32 %v297_v38, %v294_v46 }
 0x19d   :  { %v301_v55 = vadd.f32 %v299_v52, %v287_v48 }
 0x19e   :  { %v302_v56 = vadd.f32 %v300_v54, %v288_v53 }
 0x19f   :  { %v305_v43 = vmul.f32 0.1, %v301_v55  ;;  %vm303_vm13 = vcmp.gt.f32.partialorder %v301_v55, 0.0 }
 0x1a0   :  { %v306_v57 = vmul.f32 0.1, %v302_v56  ;;  %vm304_vm14 = vcmp.gt.f32.partialorder %v302_v56, 0.0 }
 0x1a1   :  { %v307_v61 = vsel %vm303_vm13, %v301_v55, %v305_v43 }
 0x1a2   :  { %v308_v11 = vsel %vm304_vm14, %v302_v56, %v306_v57  ;;  %v320_v13 = vrot.slane %v307_v61, 2  ;;  %v522_v31 = vrot.slane %v307_v61, 4  ;;  %v328_v59 = vpop.permute.xlu1 %327 }
 0x1a3   :  { %v321_v29 = vrot.slane %v308_v11, 2  ;;  %v523_v42 = vrot.slane %v308_v11, 4 }
 0x1a4   :  { %526 = vst [vmem:[#allocation5] sm:$0x30] %v522_v31  ;;  %v324_v7 = vsel %vm87_vm0, %v320_v13, %v307_v61 }
 0x1a5   :  { %v325_v58 = vsel %vm87_vm0, %v321_v29, %v308_v11  ;;  %527 = vst [vmem:[#allocation5 + $0x8] sm:$0x30] %v523_v42  ;;  %v330_v16 = vmul.f32 %v328_v59, %v324_v7 }
 0x1a6   :  { %v331_v6 = vmul.f32 %v328_v59, %v325_v58 }
 0x1a7   :  { %v332_v17 = vadd.f32 %v330_v16, %v316_v14 }
 0x1a8   :  { %v333_v3 = vadd.f32 %v331_v6, %v317_v49 }
 0x1a9   :  { %v336_v18 = vmul.f32 0.1, %v332_v17  ;;  %vm334_vm1 = vcmp.gt.f32.partialorder %v332_v17, 0.0 }
 0x1aa   :  { %v337_v15 = vmul.f32 0.1, %v333_v3  ;;  %vm335_vm15 = vcmp.gt.f32.partialorder %v333_v3, 0.0 }
 0x1ab   :  { %v896_v12 = vsel %vm334_vm1, %v332_v17, %v336_v18 }
 0x1ac   :  { %v888_v4 = vsel %vm335_vm15, %v333_v3, %v337_v15 }
 0x1ad   :  { %375 = vrot.lane.b32.xlu1 %v888_v4, %s654_s28  ;;  %350 = vrot.lane.b32.xlu2 %v888_v4, %s652_s0 }
 0x1ae   :  { %342 = vrot.lane.b32.xlu0 %v888_v4, %s653_s27 }
 0x1b5   :  { %348 = vrot.lane.b32.xlu1 %v896_v12, %s652_s0  ;;  %340 = vrot.lane.b32.xlu2 %v896_v12, %s653_s27 }
 0x1b6   :  { %406 = vperm.xlu0 %583, %v39_v5  }
 0x1bd   :  { %414 = vperm.xlu1 %584, %v39_v5   ;;  %366 = vperm.xlu2 %580, %v39_v5  }
 0x1be   :  { %373 = vrot.lane.b32.xlu0 %v896_v12, %s654_s28 }
 0x1bf   :  { %586 = vset.pattern.permute.xlu0 %v650_v8 }
 0x1c5   :  { %581 = vset.pattern.permute.xlu2 %v647_v1  ;;  %587 = vset.pattern.permute.xlu1 %v657_v45 }
 0x1c6   :  { %382 = vperm.xlu2 %581, %v39_v5  }
 0x1ce   :  { %582 = vset.pattern.permute.xlu2 %v651_v9 }
 0x1cf   :  { %398 = vperm.xlu2 %582, %v39_v5  }
 0x1d7   :  { %585 = vset.pattern.permute.xlu2 %v655_v32 }
 0x1d8   :  { %422 = vperm.xlu2 %585, %v39_v5  }
 0x1e0   :  { %447 = vrot.lane.b32.xlu2 %v888_v4, %s656_s29 }
 0x1e1   :  { %589 = vset.pattern.permute.xlu2 %v646_v0 }
 0x207   :  { %v351_v19 = vpop.permute.xlu2 %350 }
 0x20f   :  { %v341_v21 = vpop.permute.xlu2 %340 }
 0x217   :  { %v367_v24 = vpop.permute.xlu2 %366 }
 0x21f   :  { %v376_v20 = vpop.permute.xlu1 %375 }
 0x220   :  { %v343_v8 = vpop.permute.xlu0 %342  ;;  %v383_v26 = vpop.permute.xlu2 %382 }
 0x221   :  { %v344_v62 = vsel %vm121_vm6, %v341_v21, %v343_v8  ;;  %v345_v45 = vsel %vm121_vm6, %v343_v8, %v341_v21 }
 0x222   :  { %v346_v9 = vsel %vm790_vm7, %v345_v45, 0.0  ;;  %v347_v32 = vsel %vm794_vm8, %v344_v62, 0.0 }
 0x223   :  { %356 = vrot.lane.b32.xlu0 %v346_v9, %s654_s28  ;;  %431 = vrot.lane.b32.xlu2 %v347_v32, %s656_s29 }
 0x224   :  { %358 = vrot.lane.b32.xlu1 %v347_v32, %s654_s28 }
 0x227   :  { %v349_v0 = vpop.permute.xlu1 %348 }
 0x228   :  { %v352_v22 = vsel %vm134_vm3, %v349_v0, %v351_v19  ;;  %v353_v51 = vsel %vm134_vm3, %v351_v19, %v349_v0  ;;  %v407_v25 = vpop.permute.xlu0 %406 }
 0x229   :  { %v354_v23 = vsel %vm779_vm5, %v352_v22, 0.0  ;;  %v355_v47 = vsel %vm759_vm4, %v353_v51, 0.0  ;;  %v399_v30 = vpop.permute.xlu2 %398  ;;  %v410_v49 = vmul.f32 %v407_v25, %v347_v32  ;;  %v409_v59 = vmul.f32 %v407_v25, %v346_v9 }
 0x22b   :  { %389 = vrot.lane.b32.xlu0 %v354_v23, %s654_s28  ;;  %461 = vrot.lane.b32.xlu2 %v354_v23, %s656_s29 }
 0x22c   :  { %445 = vrot.lane.b32.xlu1 %v896_v12, %s656_s29 }
 0x22f   :  { %v415_v27 = vpop.permute.xlu1 %414 }
 0x230   :  { %v374_v28 = vpop.permute.xlu0 %373  ;;  %v418_v10 = vmul.f32 %v415_v27, %v888_v4  ;;  %v417_v16 = vmul.f32 %v415_v27, %v896_v12 }
 0x231   :  { %v378_v41 = vsel %vm147_vm9, %v376_v20, %v374_v28  ;;  %v377_v48 = vsel %vm147_vm9, %v374_v28, %v376_v20 }
 0x232   :  { %v423_v34 = vpop.permute.xlu2 %422  ;;  %v379_v52 = vsel %vm73_vm10, %v378_v41, 0.0  ;;  %v386_v55 = vmul.f32 %v383_v26, %v377_v48 }
 0x233   :  { %438 = vperm.xlu0 %586, %v39_v5   ;;  %487 = vperm.xlu2 %589, %v41_v50   ;;  %v385_v57 = vmul.f32 %v383_v26, %v379_v52  ;;  %v426_v3 = vmul.f32 %v423_v34, %v355_v47  ;;  %v425_v18 = vmul.f32 %v423_v34, %v354_v23 }
 0x234   :  { %454 = vperm.xlu1 %587, %v39_v5  }
 0x23b   :  { %463 = vrot.lane.b32.xlu0 %v355_v47, %s656_s29 }
 0x23c   :  { %391 = vrot.lane.b32.xlu1 %v355_v47, %s654_s28  ;;  %590 = vset.pattern.permute.xlu0 %v647_v1 }
 0x23d   :  { %588 = vset.pattern.permute.xlu1 %v658_v60  ;;  %v448_v60 = vpop.permute.xlu2 %447 }
 0x243   :  { %499 = vperm.xlu0 %590, %v41_v50  }
 0x244   :  { %429 = vrot.lane.b32.xlu1 %v346_v9, %s656_s29 }
 0x24c   :  { %470 = vperm.xlu1 %588, %v39_v5  }
 0x27d   :  { %v432_v63 = vpop.permute.xlu2 %431 }
 0x285   :  { %v462_v32 = vpop.permute.xlu2 %461 }
 0x295   :  { %v357_v33 = vpop.permute.xlu0 %356 }
 0x296   :  { %v359_v39 = vpop.permute.xlu1 %358 }
 0x297   :  { %v361_v1 = vsel %vm147_vm9, %v359_v39, %v357_v33  ;;  %v360_v44 = vsel %vm147_vm9, %v357_v33, %v359_v39 }
 0x298   :  { %v362_v46 = vsel %vm73_vm10, %v361_v1, 0.0  ;;  %v370_v53 = vmul.f32 %v367_v24, %v360_v44 }
 0x299   :  { %v369_v54 = vmul.f32 %v367_v24, %v362_v46  ;;  %v488_v46 = vpop.permute.xlu2 %487 }
 0x29a   :  { %v388_v11 = vadd.f32 %v386_v55, %v370_v53 }
 0x29b   :  { %v387_v29 = vadd.f32 %v385_v57, %v369_v54 }
 0x29d   :  { %v390_v38 = vpop.permute.xlu0 %389 }
 0x29e   :  { %v446_v37 = vpop.permute.xlu1 %445 }
 0x29f   :  { %v450_v12 = vsel %vm225_vm11, %v448_v60, %v446_v37  ;;  %v449_v50 = vsel %vm225_vm11, %v446_v37, %v448_v60 }
 0x2a0   :  { %v452_v51 = vsel %vm76_vm12, %v450_v12, 0.0 }
 0x2a5   :  { %v439_v56 = vpop.permute.xlu0 %438 }
 0x2a6   :  { %v455_v40 = vpop.permute.xlu1 %454 }
 0x2a7   :  { %v457_v47 = vmul.f32 %v455_v40, %v449_v50  ;;  %v458_v24 = vmul.f32 %v455_v40, %v452_v51 }
 0x2ad   :  { %v464_v21 = vpop.permute.xlu0 %463 }
 0x2ae   :  { %v392_v43 = vpop.permute.xlu1 %391  ;;  %v466_v0 = vsel %vm225_vm11, %v464_v21, %v462_v32  ;;  %v465_v26 = vsel %vm225_vm11, %v462_v32, %v464_v21 }
 0x2af   :  { %v393_v61 = vsel %vm147_vm9, %v390_v38, %v392_v43  ;;  %v394_v2 = vsel %vm147_vm9, %v392_v43, %v390_v38  ;;  %v468_v27 = vsel %vm76_vm12, %v466_v0, 0.0 }
 0x2b0   :  { %v395_v13 = vsel %vm73_vm10, %v394_v2, 0.0  ;;  %v402_v31 = vmul.f32 %v399_v30, %v393_v61 }
 0x2b1   :  { %v401_v42 = vmul.f32 %v399_v30, %v395_v13 }
 0x2b2   :  { %v404_v58 = vadd.f32 %v402_v31, %v388_v11 }
 0x2b3   :  { %v403_v7 = vadd.f32 %v401_v42, %v387_v29 }
 0x2b4   :  { %v412_v6 = vadd.f32 %v410_v49, %v404_v58 }
 0x2b5   :  { %v411_v14 = vadd.f32 %v409_v59, %v403_v7  ;;  %v500_v1 = vpop.permute.xlu0 %499 }
 0x2b6   :  { %v420_v15 = vadd.f32 %v418_v10, %v412_v6  ;;  %v430_v17 = vpop.permute.xlu1 %429 }
 0x2b7   :  { %v419_v5 = vadd.f32 %v417_v16, %v411_v14  ;;  %v433_v19 = vsel %vm225_vm11, %v430_v17, %v432_v63  ;;  %v434_v20 = vsel %vm225_vm11, %v432_v63, %v430_v17 }
 0x2b8   :  { %v428_v8 = vadd.f32 %v426_v3, %v420_v15  ;;  %v436_v4 = vsel %vm76_vm12, %v434_v20, 0.0  ;;  %v441_v62 = vmul.f32 %v439_v56, %v433_v19 }
 0x2b9   :  { %v427_v45 = vadd.f32 %v425_v18, %v419_v5  ;;  %v442_v9 = vmul.f32 %v439_v56, %v436_v4 }
 0x2bb   :  { %v443_v22 = vadd.f32 %v441_v62, %v427_v45  ;;  %v444_v23 = vadd.f32 %v442_v9, %v428_v8 }
 0x2bd   :  { %v459_v28 = vadd.f32 %v457_v47, %v443_v22  ;;  %v460_v30 = vadd.f32 %v458_v24, %v444_v23 }
 0x2be   :  { %v471_v25 = vpop.permute.xlu1 %470 }
 0x2bf   :  { %v473_v39 = vmul.f32 %v471_v25, %v465_v26  ;;  %v474_v33 = vmul.f32 %v471_v25, %v468_v27 }
 0x2c1   :  { %v475_v34 = vadd.f32 %v473_v39, %v459_v28  ;;  %v476_v38 = vadd.f32 %v474_v33, %v460_v30 }
 0x2c3   :  { %v492_v37 = vrot.slane %v475_v34, 2  ;;  %v493_v60 = vrot.slane %v476_v38, 2  ;;  %v479_v41 = vrot.slane %v475_v34, 6  ;;  %v480_v44 = vrot.slane %v476_v38, 6 }
 0x2c5   :  { %v496_v40 = vsel %vm87_vm0, %v492_v37, %v475_v34  ;;  %v497_v35 = vsel %vm87_vm0, %v493_v60, %v476_v38  ;;  %v483_v48 = vsel %vm87_vm0, %v475_v34, %v479_v41  ;;  %v484_v36 = vsel %vm87_vm0, %v476_v38, %v480_v44 }
 0x2c6   :  { %v502_v52 = vmul.f32 %v500_v1, %v496_v40  ;;  %v503_v53 = vmul.f32 %v500_v1, %v497_v35  ;;  %v490_v54 = vmul.f32 %v488_v46, %v483_v48  ;;  %v491_v55 = vmul.f32 %v488_v46, %v484_v36 }
 0x2c8   :  { %v504_v56 = vadd.f32 %v502_v52, %v490_v54  ;;  %v505_v43 = vadd.f32 %v503_v53, %v491_v55 }
 0x2ca   :  { %vm506_vm2 = vcmp.gt.f32.partialorder %v504_v56, 0.0  ;;  %vm507_vm3 = vcmp.gt.f32.partialorder %v505_v43, 0.0  ;;  %v508_v57 = vmul.f32 0.1, %v504_v56  ;;  %v509_v61 = vmul.f32 0.1, %v505_v43 }
 0x2cc   :  { %v510_v2 = vsel %vm506_vm2, %v504_v56, %v508_v57  ;;  %v511_v63 = vsel %vm507_vm3, %v505_v43, %v509_v61 }
 0x2cd   :  { %v516_v11 = vrot.slane %v510_v2, 6  ;;  %v517_v13 = vrot.slane %v511_v63, 6  ;;  %v528_v31 = vrot.slane %v510_v2, 4  ;;  %v529_v29 = vrot.slane %v511_v63, 4 }
 0x2cf   :  { %520 = vst [vmem:[#allocation5] sm:$0xc] %v516_v11 }
 0x2d0   :  { %521 = vst [vmem:[#allocation5 + $0x8] sm:$0xc] %v517_v13 }
 0x2d1   :  { %532 = vst [vmem:[#allocation5] sm:$0xc0] %v528_v31 }
 0x2d2   :  { %533 = vst [vmem:[#allocation5 + $0x8] sm:$0xc0] %v529_v29 }
 0x2d3   :  { %544 = dma.vmem_to_hbm [thread:$0]  %s540_s9, 256, %s542_s12, [#allocation4]  }
 0x2d4   :  { %641 = dma.done.wait [#allocation4], 256  }
 0x2d5   :  { %642 = vsyncadd [#allocation4], 4294967040 }
 0x2d6   :  { %549 = vsyncpa [#allocation3], 1 }
 0x2d7   :  { %550 = vsyncpa [#allocation4], 1 }

</bundles_post_ra>
